<compile_context>
chip_gen: v6e
topology: v6e:2x2x1
jax: 0.10.0
libtpu: 0.0.40
codegen_flags: <defaults>
</compile_context>

<pallas_src>
import jax
import jax.numpy as jnp
from jax.experimental import pallas as pl
from jax.experimental.pallas import tpu as pltpu

IN_DIM = 256
H0_DIM = 128
H1_DIM = 24
OUT_DIM = 9
H1_PAD = 32    # 24 -> 32 (sublane/lane friendly K for layer2)
OUT_PAD = 16   # 9  -> 16 (lane-dense output stores)


def mlp_kernel(x_ref, w0_ref, b0_ref, w1_ref, b1_ref, w2_ref, b2_ref, o_ref):
    # layer0: Linear(256 -> 128) + ReLU. bf16 MXU operands, f32 accumulation.
    h0 = jnp.dot(x_ref[...], w0_ref[...], preferred_element_type=jnp.float32)
    h0 = jnp.maximum(h0 + b0_ref[...], 0.0)

    # layer1: Linear(128 -> 24, padded to 32) + ReLU.
    # Cast to bf16 only right before the dot; elementwise math stays f32 (v5e VPU).
    h1 = jnp.dot(h0.astype(jnp.bfloat16), w1_ref[...],
                 preferred_element_type=jnp.float32)
    h1 = jnp.maximum(h1 + b1_ref[...], 0.0)

    # layer2: Linear(24 -> 9, padded to 32 -> 16) + softmax over the 9 real lanes.
    logits = jnp.dot(h1.astype(jnp.bfloat16), w2_ref[...],
                     preferred_element_type=jnp.float32)
    logits = logits + b2_ref[...]
    lane = jax.lax.broadcasted_iota(jnp.int32, logits.shape, dimension=1)
    logits = jnp.where(lane < OUT_DIM, logits, -jnp.inf)   # mask padded lanes
    m = jnp.max(logits, axis=-1, keepdims=True)
    e = jnp.exp(logits - m)                                # padded lanes -> 0
    denom = jnp.sum(e, axis=-1, keepdims=True)
    o_ref[...] = (e * pl.reciprocal(denom, approx=True)).astype(o_ref.dtype)


def _round_up(n, m):
    return ((n + m - 1) // m) * m


def prepare_params(params):
    """Pad narrow dims and cast MXU operands to bf16 (biases stay f32)."""
    w0 = params["w0"].astype(jnp.bfloat16)                                   # (256, 128)
    b0 = params["b0"].astype(jnp.float32)                                    # (1, 128)
    w1 = jnp.pad(params["w1"], ((0, 0), (0, H1_PAD - H1_DIM))
                 ).astype(jnp.bfloat16)                                      # (128, 32)
    b1 = jnp.pad(params["b1"], ((0, 0), (0, H1_PAD - H1_DIM))
                 ).astype(jnp.float32)                                       # (1, 32)
    w2 = jnp.pad(params["w2"], ((0, H1_PAD - H1_DIM), (0, OUT_PAD - OUT_DIM))
                 ).astype(jnp.bfloat16)                                      # (32, 16)
    b2 = jnp.pad(params["b2"], ((0, 0), (0, OUT_PAD - OUT_DIM))
                 ).astype(jnp.float32)                                       # (1, 16)
    return w0, b0, w1, b1, w2, b2


def sample_model_forward(x, params, *, tb=512):
    """x: [B, 256] float32. Returns [B, 9] float32 softmax probabilities."""
    B = x.shape[0]
    TB = min(tb, _round_up(B, 8))        # batch tile (multiple of 8 sublanes)
    B_pad = _round_up(B, TB)

    # HBM holds bf16 activations (halves the dominant input stream).
    x_p = jnp.pad(x, ((0, B_pad - B), (0, 0))).astype(jnp.bfloat16)
    w0, b0, w1, b1, w2, b2 = prepare_params(params)

    resident = lambda arr: pl.BlockSpec(arr.shape, lambda i: (0,) * arr.ndim)

    out = pl.pallas_call(
        mlp_kernel,
        out_shape=jax.ShapeDtypeStruct((B_pad, OUT_PAD), jnp.float32),
        grid=(B_pad // TB,),
        in_specs=[
            pl.BlockSpec((TB, IN_DIM), lambda i: (i, 0)),   # x: tiled over batch
            resident(w0), resident(b0),                      # weights/biases stay
            resident(w1), resident(b1),                      # VMEM-resident
            resident(w2), resident(b2),
        ],
        out_specs=pl.BlockSpec((TB, OUT_PAD), lambda i: (i, 0)),
        compiler_params=pltpu.CompilerParams(
            dimension_semantics=("parallel",),
        ),
    )(x_p, w0, b0, w1, b1, w2, b2)

    return out[:B, :OUT_DIM]


def init_params(key):
    """nn.Linear-style init: weight (out,in), bias (out,). Stored transposed as
    (in,out) and biases as (1,out) so the kernel computes y = x @ W + b."""
    ks = jax.random.split(key, 6)

    def linear(kw, kb, fan_in, fan_out):
        bound = 1.0 / jnp.sqrt(fan_in)
        w = jax.random.uniform(kw, (fan_out, fan_in), jnp.float32, -bound, bound)
        b = jax.random.uniform(kb, (fan_out,), jnp.float32, -bound, bound)
        return w.T, b.reshape(1, fan_out)

    w0, b0 = linear(ks[0], ks[1], IN_DIM, H0_DIM)
    w1, b1 = linear(ks[2], ks[3], H0_DIM, H1_DIM)
    w2, b2 = linear(ks[4], ks[5], H1_DIM, OUT_DIM)
    return {"w0": w0, "b0": b0, "w1": w1, "b1": b1, "w2": w2, "b2": b2}


def reference_forward(x, params):
    h0 = jnp.maximum(x @ params["w0"] + params["b0"], 0.0)
    h1 = jnp.maximum(h0 @ params["w1"] + params["b1"], 0.0)
    return jax.nn.softmax(h1 @ params["w2"] + params["b2"], axis=-1)


if __name__ == "__main__":
    key = jax.random.PRNGKey(0)
    k_x, k_x2, k_p = jax.random.split(key, 3)
    params = init_params(k_p)

    # Small batch (single grid step).
    B = 8
    x = jax.random.normal(k_x, (B, IN_DIM), jnp.float32)
    out = jax.block_until_ready(sample_model_forward(x, params))
    ref = reference_forward(x, params)
    assert out.shape == (B, OUT_DIM)
    # bf16 MXU operands + approx reciprocal => slightly looser tolerances vs f32 ref.
    assert jnp.allclose(out, ref, atol=2e-2, rtol=2e-2), "mismatch vs JAX reference"
    assert jnp.allclose(jnp.sum(out, axis=-1), 1.0, atol=1e-2), "softmax rows must sum to 1"

    # Non-multiple batch with multiple grid steps (exercises tiling + tail padding).
    B2 = 300
    x2 = jax.random.normal(k_x2, (B2, IN_DIM), jnp.float32)
    out2 = jax.block_until_ready(sample_model_forward(x2, params, tb=128))
    ref2 = reference_forward(x2, params)
    assert out2.shape == (B2, OUT_DIM)
    assert jnp.allclose(out2, ref2, atol=2e-2, rtol=2e-2), "mismatch vs JAX reference (tiled)"
    assert jnp.allclose(jnp.sum(out2, axis=-1), 1.0, atol=1e-2), "softmax rows must sum to 1 (tiled)"

    print("KERNEL_OK")
</pallas_src>

<mosaic_0001>
module attributes {stable_mosaic.version = 11 : i64} {
  func.func @mlp_kernel(%arg0: i32, %arg1: memref<8x256xbf16, #tpu.memory_space<vmem>>, %arg2: memref<256x128xbf16, #tpu.memory_space<vmem>>, %arg3: memref<1x128xf32, #tpu.memory_space<vmem>>, %arg4: memref<128x32xbf16, #tpu.memory_space<vmem>>, %arg5: memref<1x32xf32, #tpu.memory_space<vmem>>, %arg6: memref<32x16xbf16, #tpu.memory_space<vmem>>, %arg7: memref<1x16xf32, #tpu.memory_space<vmem>>, %arg8: memref<8x16xf32, #tpu.memory_space<vmem>>) attributes {dimension_semantics = [#tpu.dimension_semantics<parallel>], iteration_bounds = array<i64: 1>, scalar_prefetch = 0 : i64, scratch_operands = 0 : i64, tpu.core_type = #tpu.core_type<tc>, window_params = [{transform_indices = @transform_0, window_bounds = array<i64: 8, 256>}, {pipeline_mode = #tpu.pipeline_mode<synchronous>, transform_indices = @transform_1, window_bounds = array<i64: 256, 128>}, {pipeline_mode = #tpu.pipeline_mode<synchronous>, transform_indices = @transform_2, window_bounds = array<i64: 1, 128>}, {pipeline_mode = #tpu.pipeline_mode<synchronous>, transform_indices = @transform_3, window_bounds = array<i64: 128, 32>}, {pipeline_mode = #tpu.pipeline_mode<synchronous>, transform_indices = @transform_4, window_bounds = array<i64: 1, 32>}, {pipeline_mode = #tpu.pipeline_mode<synchronous>, transform_indices = @transform_5, window_bounds = array<i64: 32, 16>}, {pipeline_mode = #tpu.pipeline_mode<synchronous>, transform_indices = @transform_6, window_bounds = array<i64: 1, 16>}, {transform_indices = @transform_7, window_bounds = array<i64: 8, 16>}]} {
    %c0 = arith.constant 0 : index
    %c0_0 = arith.constant 0 : index
    %0 = vector.load %arg1[%c0, %c0_0] : memref<8x256xbf16, #tpu.memory_space<vmem>>, vector<8x256xbf16>
    %c0_1 = arith.constant 0 : index
    %c0_2 = arith.constant 0 : index
    %1 = vector.load %arg2[%c0_1, %c0_2] : memref<256x128xbf16, #tpu.memory_space<vmem>>, vector<256x128xbf16>
    %cst = arith.constant dense<0.000000e+00> : vector<8x128xf32>
    %2 = tpu.matmul %0, %1, %cst {dimension_numbers = #tpu.dot_dimension_numbers<[1], [0], [0], [1], [0, 0, 1, 1], [], []>} : vector<8x256xbf16>, vector<256x128xbf16>, vector<8x128xf32> -> vector<8x128xf32>
    %c0_3 = arith.constant 0 : index
    %c0_4 = arith.constant 0 : index
    %3 = vector.load %arg3[%c0_3, %c0_4] : memref<1x128xf32, #tpu.memory_space<vmem>>, vector<1x128xf32>
    %4 = vector.broadcast %3 : vector<1x128xf32> to vector<8x128xf32>
    %5 = arith.addf %2, %4 : vector<8x128xf32>
    %cst_5 = arith.constant 0.000000e+00 : f32
    %6 = vector.broadcast %cst_5 : f32 to vector<8x128xf32>
    %7 = arith.maximumf %5, %6 : vector<8x128xf32>
    %8 = arith.truncf %7 : vector<8x128xf32> to vector<8x128xbf16>
    %c0_6 = arith.constant 0 : index
    %c0_7 = arith.constant 0 : index
    %9 = vector.load %arg4[%c0_6, %c0_7] : memref<128x32xbf16, #tpu.memory_space<vmem>>, vector<128x32xbf16>
    %cst_8 = arith.constant dense<0.000000e+00> : vector<8x32xf32>
    %10 = tpu.matmul %8, %9, %cst_8 {dimension_numbers = #tpu.dot_dimension_numbers<[1], [0], [0], [1], [0, 0, 1, 1], [], []>} : vector<8x128xbf16>, vector<128x32xbf16>, vector<8x32xf32> -> vector<8x32xf32>
    %c0_9 = arith.constant 0 : index
    %c0_10 = arith.constant 0 : index
    %11 = vector.load %arg5[%c0_9, %c0_10] : memref<1x32xf32, #tpu.memory_space<vmem>>, vector<1x32xf32>
    %12 = vector.broadcast %11 : vector<1x32xf32> to vector<8x32xf32>
    %13 = arith.addf %10, %12 : vector<8x32xf32>
    %cst_11 = arith.constant 0.000000e+00 : f32
    %14 = vector.broadcast %cst_11 : f32 to vector<8x32xf32>
    %15 = arith.maximumf %13, %14 : vector<8x32xf32>
    %16 = arith.truncf %15 : vector<8x32xf32> to vector<8x32xbf16>
    %c0_12 = arith.constant 0 : index
    %c0_13 = arith.constant 0 : index
    %17 = vector.load %arg6[%c0_12, %c0_13] : memref<32x16xbf16, #tpu.memory_space<vmem>>, vector<32x16xbf16>
    %cst_14 = arith.constant dense<0.000000e+00> : vector<8x16xf32>
    %18 = tpu.matmul %16, %17, %cst_14 {dimension_numbers = #tpu.dot_dimension_numbers<[1], [0], [0], [1], [0, 0, 1, 1], [], []>} : vector<8x32xbf16>, vector<32x16xbf16>, vector<8x16xf32> -> vector<8x16xf32>
    %c0_15 = arith.constant 0 : index
    %c0_16 = arith.constant 0 : index
    %19 = vector.load %arg7[%c0_15, %c0_16] : memref<1x16xf32, #tpu.memory_space<vmem>>, vector<1x16xf32>
    %20 = vector.broadcast %19 : vector<1x16xf32> to vector<8x16xf32>
    %21 = arith.addf %18, %20 : vector<8x16xf32>
    %22 = tpu.iota {dimensions = array<i32: 1>} : vector<8x16xi32>
    %c9_i32 = arith.constant 9 : i32
    %23 = vector.broadcast %c9_i32 : i32 to vector<8x16xi32>
    %24 = arith.cmpi slt, %22, %23 : vector<8x16xi32>
    %cst_17 = arith.constant 0xFF800000 : f32
    %25 = vector.broadcast %cst_17 : f32 to vector<8x16xf32>
    %26 = arith.select %24, %21, %25 : vector<8x16xi1>, vector<8x16xf32>
    %cst_18 = arith.constant dense<0xFF800000> : vector<8xf32>
    %27 = vector.multi_reduction <maximumf>, %26, %cst_18 [1] : vector<8x16xf32> to vector<8xf32>
    %28 = vector.shape_cast %27 : vector<8xf32> to vector<8x1xf32>
    %29 = vector.broadcast %28 : vector<8x1xf32> to vector<8x16xf32>
    %30 = arith.subf %26, %29 : vector<8x16xf32>
    %31 = math.exp %30 : vector<8x16xf32>
    %cst_19 = arith.constant dense<0.000000e+00> : vector<8xf32>
    %32 = vector.multi_reduction <add>, %31, %cst_19 [1] : vector<8x16xf32> to vector<8xf32>
    %33 = vector.shape_cast %32 : vector<8xf32> to vector<8x1xf32>
    %34 = tpu.reciprocal %33 {approx = true} : vector<8x1xf32> -> vector<8x1xf32>
    %35 = vector.broadcast %34 : vector<8x1xf32> to vector<8x16xf32>
    %36 = arith.mulf %31, %35 : vector<8x16xf32>
    %c0_20 = arith.constant 0 : index
    %c0_21 = arith.constant 0 : index
    %37 = vector.load %arg8[%c0_20, %c0_21] : memref<8x16xf32, #tpu.memory_space<vmem>>, vector<8x16xf32>
    tpu.vector_store %arg8[%c0_20, %c0_21], %36 {strides = array<i32>} : memref<8x16xf32, #tpu.memory_space<vmem>>, vector<8x16xf32>,
    return
  }
  func.func @transform_0(%arg0: i32) -> (i32, i32) {
    %c0_i32 = arith.constant 0 : i32
    %c0_i32_0 = arith.constant 0 : i32
    return %arg0, %c0_i32 : i32, i32
  }
  func.func @transform_1(%arg0: i32) -> (i32, i32) {
    %c0_i32 = arith.constant 0 : i32
    %c0_i32_0 = arith.constant 0 : i32
    %c0_i32_1 = arith.constant 0 : i32
    return %c0_i32, %c0_i32_0 : i32, i32
  }
  func.func @transform_2(%arg0: i32) -> (i32, i32) {
    %c0_i32 = arith.constant 0 : i32
    %c0_i32_0 = arith.constant 0 : i32
    %c0_i32_1 = arith.constant 0 : i32
    return %c0_i32, %c0_i32_0 : i32, i32
  }
  func.func @transform_3(%arg0: i32) -> (i32, i32) {
    %c0_i32 = arith.constant 0 : i32
    %c0_i32_0 = arith.constant 0 : i32
    %c0_i32_1 = arith.constant 0 : i32
    return %c0_i32, %c0_i32_0 : i32, i32
  }
  func.func @transform_4(%arg0: i32) -> (i32, i32) {
    %c0_i32 = arith.constant 0 : i32
    %c0_i32_0 = arith.constant 0 : i32
    %c0_i32_1 = arith.constant 0 : i32
    return %c0_i32, %c0_i32_0 : i32, i32
  }
  func.func @transform_5(%arg0: i32) -> (i32, i32) {
    %c0_i32 = arith.constant 0 : i32
    %c0_i32_0 = arith.constant 0 : i32
    %c0_i32_1 = arith.constant 0 : i32
    return %c0_i32, %c0_i32_0 : i32, i32
  }
  func.func @transform_6(%arg0: i32) -> (i32, i32) {
    %c0_i32 = arith.constant 0 : i32
    %c0_i32_0 = arith.constant 0 : i32
    %c0_i32_1 = arith.constant 0 : i32
    return %c0_i32, %c0_i32_0 : i32, i32
  }
  func.func @transform_7(%arg0: i32) -> (i32, i32) {
    %c0_i32 = arith.constant 0 : i32
    %c0_i32_0 = arith.constant 0 : i32
    return %arg0, %c0_i32 : i32, i32
  }
}

</mosaic_0001>

<bundles_post_ra>
// kernel: tpu_custom_call.1
= control target key start
LH: loop header
LB: loop body
LE: loop exit
PB: predicated region body
PF: predicated region fallthrough
CT: control target
= control target key end

     0   :  { %12 = vsyncpa [#allocation3], 0  ;;  %s724_s0 = inlined_call_operand.vmem [shape: bf16[8,256], index: 0, kind: input, shape index: {}]   ;;  %s725_s1 = inlined_call_operand.hbm [shape: bf16[256,128], index: 1, kind: input, shape index: {}]   ;;  %s726_s2 = inlined_call_operand.vmem [shape: f32[1,128], index: 2, kind: input, shape index: {}]   ;;  %s727_s3 = inlined_call_operand.vmem [shape: bf16[128,32], index: 3, kind: input, shape index: {}]   ;;  %s728_s4 = inlined_call_operand.vmem [shape: f32[1,32], index: 4, kind: input, shape index: {}]   ;;  %s729_s5 = inlined_call_operand.vmem [shape: bf16[32,16], index: 5, kind: input, shape index: {}]   ;;  %s730_s6 = inlined_call_operand.vmem [shape: f32[1,16], index: 6, kind: input, shape index: {}]   ;;  %s731_s7 = inlined_call_operand.hbm [shape: f32[8,16], index: 7, kind: output, shape index: {}]  }
   0x1   :  { %13 = vsyncpa [#allocation4], 0  ;;  %s615_s24 = smov [#allocation2]  }
   0x2   :  { %s21_s25 = sshll.u32 %s615_s24, 4  ;;  %s22_s25 = int_to_ptr.vmem [resolvable:$true] %s21_s25 }
   0x3   :  { %s579_s26 = scalar_lea.vmem %s22_s25, 2048  ;;  %p584_p1 = scmp.lt.s32.totalorder %s22_s25, %s22_s25 }
   0x4   :  { %p580_p0 = scmp.ne.s32.totalorder %s22_s25, %s579_s26  ;;  %p585_p2 = scmp.lt.s32.totalorder %s579_s26, %s579_s26 }
   0x6   :  { %p586_p3 = por %p585_p2, %p584_p1 }
   0x8   :  { %p587_p4 = pnand %p586_p3, %p580_p0 }
   0xa   :  { %590 = shalt.err (!%p587_p4)
}
   0xb   :  { %s616_s27 = smov 64   ;;  %s617_s28 = smov 4  }
   0xc   :  { %27 = dma.hbm_to_vmem [thread:$0]  %s725_s1, 2048, %s22_s25, [#allocation3], %s616_s27, %s616_s27, %s617_s28  }
   0xd   :  { %611 = dma.done.wait [#allocation3], 2048  }
   0xe   :  { %612 = vsyncadd [#allocation3], 4294965248  ;;  %v618_v0 = vmov 0.0   ;;  %v539_v1 = vld [vmem:[#allocation2 + $0x78] sm:$0xff]   ;;  %v541_v3 = vld [vmem:[#allocation2 + $0x70] sm:$0xff]   ;;  %vm619_vm0 = vmmov 0   ;;  %v407_v47 = vlaneseq }
   0xf   :  { %505 = vmatprep.subr.bf16.mxu1 %v618_v0  ;;  %v540_v2 = vld [vmem:[#allocation2 + $0x38] sm:$0xff]   ;;  %471 = vmatprep.subr.bf16.mxu0 %v539_v1  ;;  %v542_v4 = vld [vmem:[#allocation2 + $0x30] sm:$0xff]   ;;  %v543_v5 = vld [vmem:[#allocation2 + $0x68] sm:$0xff]   ;;  %vm363_vm1 = vcmask 261120   ;;  %vm411_vm3 = vcmask 130048  }
  0x10   :  { %472 = vmatpush3.bf16.msra.mxu0 %v540_v2  ;;  %v544_v6 = vld [vmem:[#allocation2 + $0x28] sm:$0xff]   ;;  %v545_v7 = vld [vmem:[#allocation2 + $0x60] sm:$0xff]   ;;  %v547_v9 = vld [vmem:[#allocation2 + $0x58] sm:$0xff]   ;;  %521 = vmatprep.mubr.msk.bf16.mxu1 %vm619_vm0, %v618_v0  ;;  %v408_v48 = vand.u32 127, %v407_v47 }
  0x11   :  { %473 = vmatprep.subr.bf16.mxu0 %v541_v3  ;;  %v546_v8 = vld [vmem:[#allocation2 + $0x20] sm:$0xff]   ;;  %v548_v10 = vld [vmem:[#allocation2 + $0x18] sm:$0xff]   ;;  %v549_v11 = vld [vmem:[#allocation2 + $0x50] sm:$0xff]  }
  0x12   :  { %v42_v12 = vld [vmem:[%s724_s0] sm:$0xff]  ;;  %v557_v14 = vld [vmem:[%s727_s3 + $0x38] sm:$0xff]   ;;  %v550_v15 = vld [vmem:[#allocation2 + $0x10] sm:$0xff]   ;;  %vm409_vm2 = vcmp.lt.s32.totalorder %v408_v48, 9 }
  0x13   :  { %v441_v13 = vcombine.high %v42_v12, %v42_v12  ;;  %v551_v16 = vld [vmem:[#allocation2 + $0x48] sm:$0xff]   ;;  %506 = vmatpush3.bf16.msra.mxu1 %v557_v14  ;;  %v558_v17 = vld [vmem:[%s727_s3 + $0x30] sm:$0xff]   ;;  %v553_v19 = vld [vmem:[#allocation2 + $0x40] sm:$0xff]   ;;  %v440_v23 = vcombine.low %v42_v12, %v42_v12 }
  0x14   :  { %474 = vmatpush3.bf16.msra.mxu0 %v542_v4  ;;  %v552_v18 = vld [vmem:[#allocation2 + $0x8] sm:$0xff]   ;;  %507 = vmatprep.subr.bf16.mxu1 %v618_v0  ;;  %v554_v21 = vld [vmem:[#allocation2] sm:$0xff]   ;;  %v561_v24 = vld [vmem:[%s727_s3 + $0x18] sm:$0xff]  }
  0x15   :  { %475 = vmatprep.subr.bf16.mxu0 %v543_v5  ;;  %217 = vmatprep.mubr.bf16.mxu0 %v441_v13  ;;  %v559_v20 = vld [vmem:[%s727_s3 + $0x28] sm:$0xff]   ;;  %v560_v22 = vld [vmem:[%s727_s3 + $0x20] sm:$0xff]   ;;  %v562_v25 = vld [vmem:[%s727_s3 + $0x10] sm:$0xff]  }
  0x16   :  { %v563_v26 = vld [vmem:[%s727_s3 + $0x8] sm:$0xff]   ;;  %v564_v27 = vld [vmem:[%s727_s3] sm:$0xff]  }
  0x17   :  { %508 = vmatpush3.bf16.msra.mxu1 %v558_v17  ;;  %v565_v28 = vld [vmem:[%s729_s5 + $0x8] sm:$0xff]   ;;  %v439_v30 = vld [vmem:[%s726_s2] ss:$0 sm:$0xff] }
  0x18   :  { %476 = vmatpush3.bf16.msra.mxu0 %v544_v6  ;;  %509 = vmatprep.subr.bf16.mxu1 %v618_v0  ;;  %v566_v38 = vld [vmem:[%s729_s5] sm:$0xff]  }
  0x19   :  { %477 = vmatprep.subr.bf16.mxu0 %v545_v7  ;;  %v458_v39 = vld [vmem:[%s728_s4] ss:$0 sm:$0xff]  ;;  %s620_s4 = smov [#allocation5]  }
  0x1a   :  { %v467_v49 = vld [vmem:[%s730_s6] ss:$0 sm:$0xff]  ;;  %s430_s5 = sshll.u32 %s620_s4, 4  ;;  %s431_s5 = int_to_ptr.vmem [resolvable:$true] %s430_s5 }
  0x1b   :  { %510 = vmatpush3.bf16.msra.mxu1 %v559_v20  ;;  %s591_s6 = scalar_lea.vmem %s431_s5, 128  ;;  %p596_p6 = scmp.lt.s32.totalorder %s431_s5, %s431_s5 }
  0x1c   :  { %478 = vmatpush3.bf16.msra.mxu0 %v546_v8  ;;  %511 = vmatprep.subr.bf16.mxu1 %v618_v0  ;;  %p592_p5 = scmp.ne.s32.totalorder %s431_s5, %s591_s6  ;;  %p597_p7 = scmp.lt.s32.totalorder %s591_s6, %s591_s6 }
  0x1d   :  { %479 = vmatprep.subr.bf16.mxu0 %v547_v9 }
  0x1e   :  { %p598_p8 = por %p597_p7, %p596_p6 }
  0x1f   :  { %512 = vmatpush3.bf16.msra.mxu1 %v560_v22 }
  0x20   :  { %480 = vmatpush3.bf16.msra.mxu0 %v548_v10  ;;  %513 = vmatprep.subr.bf16.mxu1 %v618_v0  ;;  %p599_p9 = pnand %p598_p8, %p592_p5 }
  0x21   :  { %481 = vmatprep.subr.bf16.mxu0 %v549_v11 }
  0x23   :  { %514 = vmatpush3.bf16.msra.mxu1 %v561_v24 }
  0x24   :  { %482 = vmatpush3.bf16.msra.mxu0 %v550_v15  ;;  %515 = vmatprep.subr.bf16.mxu1 %v618_v0 }
  0x25   :  { %483 = vmatprep.subr.bf16.mxu0 %v551_v16 }
  0x27   :  { %516 = vmatpush3.bf16.msra.mxu1 %v562_v25 }
  0x28   :  { %484 = vmatpush3.bf16.msra.mxu0 %v552_v18  ;;  %517 = vmatprep.subr.bf16.mxu1 %v618_v0 }
  0x29   :  { %485 = vmatprep.subr.bf16.mxu0 %v553_v19 }
  0x2b   :  { %518 = vmatpush3.bf16.msra.mxu1 %v563_v26 }
  0x2c   :  { %486 = vmatpush3.bf16.msra.mxu0 %v554_v21  ;;  %519 = vmatprep.subr.bf16.mxu1 %v618_v0 }
  0x2d   :  { %525 = vmatprep.subr.bf16.mxu0 %v618_v0 }
  0x2f   :  { %218 = vmatmul.mubr.bf16.vlgmr.msra.gmra.mxu0 %v440_v23  ;;  %520 = vmatpush3.bf16.msra.mxu1 %v564_v27 }
  0x30   :  { %529 = vmatprep.mubr.msk.bf16.mxu0 %vm619_vm0, %v618_v0  ;;  %526 = vmatpush3.bf16.msra.mxu0 %v565_v28 }
  0x31   :  { %527 = vmatprep.subr.bf16.mxu0 %v618_v0 }
  0x34   :  { %528 = vmatpush3.bf16.msra.mxu0 %v566_v38 }
  0xef   :  { %v487_v29 = vpop.f32.mrf.mxu0 }
  0xf1   :  { %v488_v31 = vpop.f32.mrf.mxu0 }
  0xf2   :  { %v489_v32 = vadd.f32 %v488_v31, %v487_v29 }
  0xf3   :  { %v490_v33 = vpop.f32.mrf.mxu0 }
  0xf4   :  { %v220_v34 = vadd.f32 %v489_v32, %v439_v30 }
  0xf5   :  { %v491_v35 = vpop.f32.mrf.mxu0 }
  0xf6   :  { %v225_v36 = vmax.f32 %v220_v34, 0.0 }
  0xf8   :  { %v226_v37 = vpack.c.bf16 %v225_v36, %v225_v36 }
  0xfa   :  { %522 = vmatmul.mubr.bf16.vlgmr.msra.gmra.mxu1 %v226_v37 }
 0x1ba   :  { %v332_v40 = vpop.f32.mrf.mxu1 }
 0x1bb   :  { %v333_v41 = vadd.f32 %v458_v39, %v332_v40 }
 0x1bc   :  { %v523_v42 = vpop.f32.mrf.mxu1 }
 0x1bd   :  { %v338_v43 = vmax.f32 %v333_v41, 0.0 }
 0x1be   :  { %v335_v44 = vpop.f32.mrf.mxu1 }
 0x1bf   :  { %v339_v45 = vpack.c.bf16 %v338_v43, %v338_v43 }
 0x1c0   :  { %v524_v46 = vpop.f32.mrf.mxu1 }
 0x1c1   :  { %530 = vmatmul.mubr.msk.bf16.vlgmr.msra.gmra.mxu0 %vm363_vm1, %v339_v45 }
 0x281   :  { %v401_v50 = vpop.f32.mrf.mxu0 }
 0x282   :  { %v402_v51 = vadd.f32 %v467_v49, %v401_v50 }
 0x283   :  { %v531_v52 = vpop.f32.mrf.mxu0 }
 0x284   :  { %v410_v53 = vsel %vm409_vm2, %v402_v51, -inf }
 0x285   :  { %v404_v54 = vpop.f32.mrf.mxu0  ;;  %v412_v55 = vsel %vm411_vm3, %v410_v53, -inf }
 0x286   :  { %413 = vmax.xlane.f32.xlu0 %v412_v55 }
 0x287   :  { %v532_v56 = vpop.f32.mrf.mxu0 }
 0x30f   :  { %v414_v57 = vpop.xlane.xlu0 %413 }
 0x310   :  { %v415_v58 = vsub.f32 %v410_v53, %v414_v57 }
 0x312   :  { %v416_v59 = vmul.f32 1.442695, %v415_v58 }
 0x314   :  { %567 = vpow2.f32 %v416_v59 }
 0x321   :  { %v568_v60 = vpop.eup %567 }
 0x322   :  { %v418_v61 = vsel %vm411_vm3, %v568_v60, 0.0 }
 0x323   :  { %419 = vadd.xlane.f32.xlu0 %v418_v61 }
 0x3ac   :  { %v420_v62 = vpop.xlane.xlu0 %419 }
 0x3ad   :  { %569 = vrcp.f32 %v420_v62 }
 0x3ba   :  { %v570_v63 = vpop.eup %569 }
 0x3bb   :  { %v422_v0 = vmul.f32 %v570_v63, %v568_v60 }
 0x3bd   :  { %423 = vst.msk [vmem:[#allocation5] sm:$0xff] %vm411_vm3, %v422_v0 }
 0x3be   :  { %602 = shalt.err (!%p599_p9)
}
 0x3bf   :  { %433 = dma.vmem_to_hbm [thread:$0]  %s431_s5, 128, %s731_s7, [#allocation4]  }
 0x3c0   :  { %613 = dma.done.wait [#allocation4], 128  }
 0x3c1   :  { %614 = vsyncadd [#allocation4], 4294967168 }
 0x3c2   :  { %437 = vsyncpa [#allocation3], 1 }
 0x3c3   :  { %438 = vsyncpa [#allocation4], 1 }

</bundles_post_ra>
